<compile_context>
chip_gen: v7x
topology: tpu7x:2x2x1
jax: 0.10.0
libtpu: 0.0.40
codegen_flags: <defaults>
</compile_context>

<pallas_src>
import jax
import jax.numpy as jnp
from jax.experimental import pallas as pl
from jax.experimental.pallas import tpu as pltpu

BOARD_DIM = 8 * 8 * 13          # 832  flattened one-hot piece planes
TURN_DIM = 8 * 8                # 64   projected-turn features
IN_DIM = BOARD_DIM + TURN_DIM   # 896  fan-in of layer 1 (matches [8,8,14] flatten)
HID_DIM = 256
LATENT_DIM = 128                # latent_dim of the embedding head
NUM_CLASSES = 2                 # [black_win, white_win]
TB_MAX = 1024                   # batch tile (review: sweep 512-2048; 1024 fits all gens)


def _round_up(x, m):
    return (x + m - 1) // m * m


def _engine_kernel(x_ref, t_ref, w1_ref, v_ref, b1_ref, w2_ref, b2_ref, emb_ref):
    """Fused encode_games + embedding MLP for one batch tile.

    x_ref : [TB, 832] int8 one-hot board planes
    t_ref : [TB, 1]   f32  turn flag (0/1)
    w1_ref: [832, 256] bf16
    v_ref : [1, 256]   f32  (= w_turn @ W1_turn, folded turn projection)
    b1_ref: [1, 256]   f32  (= b1 + b_turn @ W1_turn)
    w2_ref: [256, 128] bf16,  b2_ref: [1, 128] f32
    emb_ref: [TB, 128] bf16 embedding output (lane-dense)
    """
    # int8 one-hot -> bf16 MXU operand (exact; values are 0/1).  The i8->f32
    # step is the standard dequant path; f32->bf16 is a trivial truncation.
    x = x_ref[...].astype(jnp.float32).astype(jnp.bfloat16)

    # Layer 1: board part on the MXU (bf16 x bf16 -> f32 acc),
    # turn projection folded into a rank-1 VPU update.
    h = jnp.dot(x, w1_ref[...], preferred_element_type=jnp.float32)
    h = h + t_ref[...] * v_ref[...]                 # turns * (w_turn @ W1_turn)
    h = jnp.maximum(h + b1_ref[...], 0.0)           # bias + ReLU in f32 (v5e-safe)

    # Layer 2 -> latent embedding.
    emb = jnp.dot(h.astype(jnp.bfloat16), w2_ref[...],
                  preferred_element_type=jnp.float32) + b2_ref[...]
    emb = jnp.maximum(emb, 0.0)                     # ReLU, f32 VPU
    emb_ref[...] = emb.astype(emb_ref.dtype)        # bf16 writeback


def init_params(key):
    ks = jax.random.split(key, 9)

    def s(k, shape, fan_in):
        return (jax.random.normal(k, shape, jnp.float32)
                / jnp.sqrt(jnp.float32(fan_in)))

    return {
        # turn_projection: nn.Linear(1, 8*8)
        "w_turn": s(ks[0], (1, TURN_DIM), 1),
        "b_turn": s(ks[1], (1, TURN_DIM), 1),
        # embedding MLP: 896 -> 256 -> 128 (first layer stored row-split)
        "w1_board": s(ks[2], (BOARD_DIM, HID_DIM), IN_DIM),
        "w1_turn": s(ks[3], (TURN_DIM, HID_DIM), IN_DIM),
        "b1": s(ks[4], (1, HID_DIM), IN_DIM),
        "w2": s(ks[5], (HID_DIM, LATENT_DIM), HID_DIM),
        "b2": s(ks[6], (1, LATENT_DIM), HID_DIM),
        # classifier: 128 -> 2 (computed in the wrapper; tiny GEMV)
        "wc": s(ks[7], (LATENT_DIM, NUM_CLASSES), LATENT_DIM),
        "bc": s(ks[8], (1, NUM_CLASSES), LATENT_DIM),
    }


def prepare_weights(params):
    """Fold the turn projection algebraically and cast MXU operands to bf16.

    projected_turns = turns @ w_turn + b_turn          (turns is 0/1)
    h_turn = projected_turns @ W1_turn
           = turns * (w_turn @ W1_turn) + (b_turn @ W1_turn)
    so v := w_turn @ W1_turn becomes a rank-1 VPU update and b_turn @ W1_turn
    folds into the layer-1 bias.  Exact algebra, done once in f32.
    """
    w1t = params["w1_turn"]
    v = params["w_turn"] @ w1t                        # [1, HID_DIM]
    b1_eff = params["b1"] + params["b_turn"] @ w1t    # [1, HID_DIM]
    return {
        "w1b": params["w1_board"].astype(jnp.bfloat16),
        "v": v.astype(jnp.float32),
        "b1": b1_eff.astype(jnp.float32),
        "w2": params["w2"].astype(jnp.bfloat16),
        "b2": params["b2"].astype(jnp.float32),
        "wc": params["wc"],
        "bc": params["bc"],
    }


def deep_engine_forward(one_hots, turns, weights):
    """Equivalent of DeepEngineModule.forward(..., head='board_evaluation').

    one_hots: [B, 8, 8, 13] one-hot piece planes (0/1 values, any real/int dtype)
    turns:    [B, 1]        turn flags (int(game.board.turn))
    returns:  (scores [B, 2] f32, embedding [B, latent_dim] bf16)
    """
    B = one_hots.shape[0]

    # int8 transport of the dominant HBM stream (exact for one-hot data).
    # The [B,8,8,13] -> [B,832] reshape of a contiguous array is a free bitcast.
    x_board = one_hots.reshape(B, BOARD_DIM)
    if x_board.dtype != jnp.int8:
        x_board = x_board.astype(jnp.int8)
    turns_f = turns.reshape(B, 1).astype(jnp.float32)

    # Batch tile: large enough to amortize per-step pipeline overhead and reach
    # HBM roofline, but small enough that medium batches still give >=2 grid
    # steps so both v7x TensorCores get work.
    TB = min(TB_MAX, _round_up(-(-B // 2), 8))
    B_pad = _round_up(B, TB)
    if B_pad != B:
        x_board = jnp.pad(x_board, ((0, B_pad - B), (0, 0)))
        turns_f = jnp.pad(turns_f, ((0, B_pad - B), (0, 0)))

    def batch_spec(n):
        return pl.BlockSpec((TB, n), lambda i: (i, 0))

    def resident_spec(shape):
        return pl.BlockSpec(shape, lambda i: (0, 0))

    emb_pad = pl.pallas_call(
        _engine_kernel,
        out_shape=jax.ShapeDtypeStruct((B_pad, LATENT_DIM), jnp.bfloat16),
        grid=(B_pad // TB,),
        in_specs=[
            batch_spec(BOARD_DIM),                   # x_board tile (int8)
            batch_spec(1),                           # turns tile (f32)
            resident_spec((BOARD_DIM, HID_DIM)),     # w1_board (bf16)
            resident_spec((1, HID_DIM)),             # v = w_turn @ W1_turn (f32)
            resident_spec((1, HID_DIM)),             # folded b1 (f32)
            resident_spec((HID_DIM, LATENT_DIM)),    # w2 (bf16)
            resident_spec((1, LATENT_DIM)),          # b2 (f32)
        ],
        out_specs=batch_spec(LATENT_DIM),
        compiler_params=pltpu.CompilerParams(
            dimension_semantics=("parallel",),
            vmem_limit_bytes=32 * 1024 * 1024,       # headroom; safe on v5e-v7x
        ),
    )(x_board, turns_f, weights["w1b"], weights["v"], weights["b1"],
      weights["w2"], weights["b2"])

    embedding = emb_pad[:B]                          # [B, latent_dim] bf16
    # Classifier head (128 -> 2): trivial GEMV in XLA; cheaper than writing a
    # 128-lane padded score slab back from the kernel and slicing it.
    scores = jnp.dot(embedding, weights["wc"],
                     preferred_element_type=jnp.float32) + weights["bc"]
    # Module returns (scores, embedding)
    return scores, embedding


if __name__ == "__main__":
    key = jax.random.PRNGKey(0)
    k_params, k_board, k_turn = jax.random.split(key, 3)

    B = 2
    # Synthetic "game.one_hot()": [B, 8, 8, 13] one-hot piece planes, int8 transport.
    piece_ids = jax.random.randint(k_board, (B, 8, 8), 0, 13)
    one_hots = jax.nn.one_hot(piece_ids, 13, dtype=jnp.int8)              # [2, 8, 8, 13]
    # Synthetic turns: int(game.board.turn) in {0, 1}, as float column vector.
    turns = jax.random.randint(k_turn, (B, 1), 0, 2).astype(jnp.float32)  # [2, 1]

    params = init_params(k_params)
    weights = prepare_weights(params)

    fwd = jax.jit(deep_engine_forward)
    scores, embedding = fwd(one_hots, turns, weights)
    jax.block_until_ready((scores, embedding))

    assert scores.shape == (B, NUM_CLASSES)
    assert embedding.shape == (B, LATENT_DIM)
    assert bool(jnp.all(jnp.isfinite(scores)))
    assert bool(jnp.all(jnp.isfinite(embedding.astype(jnp.float32))))
    print("KERNEL_OK")
</pallas_src>

<mosaic_0001>
module attributes {stable_mosaic.version = 11 : i64} {
  func.func @_engine_kernel(%arg0: i32, %arg1: memref<8x832xi8, #tpu.memory_space<vmem>>, %arg2: memref<8x1xf32, #tpu.memory_space<vmem>>, %arg3: memref<832x256xbf16, #tpu.memory_space<vmem>>, %arg4: memref<1x256xf32, #tpu.memory_space<vmem>>, %arg5: memref<1x256xf32, #tpu.memory_space<vmem>>, %arg6: memref<256x128xbf16, #tpu.memory_space<vmem>>, %arg7: memref<1x128xf32, #tpu.memory_space<vmem>>, %arg8: memref<8x128xbf16, #tpu.memory_space<vmem>>) attributes {dimension_semantics = [#tpu.dimension_semantics<parallel>], iteration_bounds = array<i64: 1>, scalar_prefetch = 0 : i64, scratch_operands = 0 : i64, tpu.core_type = #tpu.core_type<tc>, window_params = [{transform_indices = @transform_0, window_bounds = array<i64: 8, 832>}, {transform_indices = @transform_1, window_bounds = array<i64: 8, 1>}, {pipeline_mode = #tpu.pipeline_mode<synchronous>, transform_indices = @transform_2, window_bounds = array<i64: 832, 256>}, {pipeline_mode = #tpu.pipeline_mode<synchronous>, transform_indices = @transform_3, window_bounds = array<i64: 1, 256>}, {pipeline_mode = #tpu.pipeline_mode<synchronous>, transform_indices = @transform_4, window_bounds = array<i64: 1, 256>}, {pipeline_mode = #tpu.pipeline_mode<synchronous>, transform_indices = @transform_5, window_bounds = array<i64: 256, 128>}, {pipeline_mode = #tpu.pipeline_mode<synchronous>, transform_indices = @transform_6, window_bounds = array<i64: 1, 128>}, {transform_indices = @transform_7, window_bounds = array<i64: 8, 128>}]} {
    %c0 = arith.constant 0 : index
    %c0_0 = arith.constant 0 : index
    %0 = vector.load %arg1[%c0, %c0_0] : memref<8x832xi8, #tpu.memory_space<vmem>>, vector<8x832xi8>
    %1 = arith.sitofp %0 : vector<8x832xi8> to vector<8x832xf32>
    %2 = arith.truncf %1 : vector<8x832xf32> to vector<8x832xbf16>
    %c0_1 = arith.constant 0 : index
    %c0_2 = arith.constant 0 : index
    %3 = vector.load %arg3[%c0_1, %c0_2] : memref<832x256xbf16, #tpu.memory_space<vmem>>, vector<832x256xbf16>
    %cst = arith.constant dense<0.000000e+00> : vector<8x256xf32>
    %4 = tpu.matmul %2, %3, %cst {dimension_numbers = #tpu.dot_dimension_numbers<[1], [0], [0], [1], [0, 0, 1, 1], [], []>} : vector<8x832xbf16>, vector<832x256xbf16>, vector<8x256xf32> -> vector<8x256xf32>
    %c0_3 = arith.constant 0 : index
    %c0_4 = arith.constant 0 : index
    %5 = vector.load %arg2[%c0_3, %c0_4] : memref<8x1xf32, #tpu.memory_space<vmem>>, vector<8x1xf32>
    %c0_5 = arith.constant 0 : index
    %c0_6 = arith.constant 0 : index
    %6 = vector.load %arg4[%c0_5, %c0_6] : memref<1x256xf32, #tpu.memory_space<vmem>>, vector<1x256xf32>
    %7 = vector.broadcast %5 : vector<8x1xf32> to vector<8x256xf32>
    %8 = vector.broadcast %6 : vector<1x256xf32> to vector<8x256xf32>
    %9 = arith.mulf %7, %8 : vector<8x256xf32>
    %10 = arith.addf %4, %9 : vector<8x256xf32>
    %c0_7 = arith.constant 0 : index
    %c0_8 = arith.constant 0 : index
    %11 = vector.load %arg5[%c0_7, %c0_8] : memref<1x256xf32, #tpu.memory_space<vmem>>, vector<1x256xf32>
    %12 = vector.broadcast %11 : vector<1x256xf32> to vector<8x256xf32>
    %13 = arith.addf %10, %12 : vector<8x256xf32>
    %cst_9 = arith.constant 0.000000e+00 : f32
    %14 = vector.broadcast %cst_9 : f32 to vector<8x256xf32>
    %15 = arith.maximumf %13, %14 : vector<8x256xf32>
    %16 = arith.truncf %15 : vector<8x256xf32> to vector<8x256xbf16>
    %c0_10 = arith.constant 0 : index
    %c0_11 = arith.constant 0 : index
    %17 = vector.load %arg6[%c0_10, %c0_11] : memref<256x128xbf16, #tpu.memory_space<vmem>>, vector<256x128xbf16>
    %cst_12 = arith.constant dense<0.000000e+00> : vector<8x128xf32>
    %18 = tpu.matmul %16, %17, %cst_12 {dimension_numbers = #tpu.dot_dimension_numbers<[1], [0], [0], [1], [0, 0, 1, 1], [], []>} : vector<8x256xbf16>, vector<256x128xbf16>, vector<8x128xf32> -> vector<8x128xf32>
    %c0_13 = arith.constant 0 : index
    %c0_14 = arith.constant 0 : index
    %19 = vector.load %arg7[%c0_13, %c0_14] : memref<1x128xf32, #tpu.memory_space<vmem>>, vector<1x128xf32>
    %20 = vector.broadcast %19 : vector<1x128xf32> to vector<8x128xf32>
    %21 = arith.addf %18, %20 : vector<8x128xf32>
    %cst_15 = arith.constant 0.000000e+00 : f32
    %22 = vector.broadcast %cst_15 : f32 to vector<8x128xf32>
    %23 = arith.maximumf %21, %22 : vector<8x128xf32>
    %24 = arith.truncf %23 : vector<8x128xf32> to vector<8x128xbf16>
    %c0_16 = arith.constant 0 : index
    %c0_17 = arith.constant 0 : index
    %25 = vector.load %arg8[%c0_16, %c0_17] : memref<8x128xbf16, #tpu.memory_space<vmem>>, vector<8x128xbf16>
    tpu.vector_store %arg8[%c0_16, %c0_17], %24 {strides = array<i32>} : memref<8x128xbf16, #tpu.memory_space<vmem>>, vector<8x128xbf16>,
    return
  }
  func.func @transform_0(%arg0: i32) -> (i32, i32) {
    %c0_i32 = arith.constant 0 : i32
    %c0_i32_0 = arith.constant 0 : i32
    return %arg0, %c0_i32 : i32, i32
  }
  func.func @transform_1(%arg0: i32) -> (i32, i32) {
    %c0_i32 = arith.constant 0 : i32
    %c0_i32_0 = arith.constant 0 : i32
    return %arg0, %c0_i32 : i32, i32
  }
  func.func @transform_2(%arg0: i32) -> (i32, i32) {
    %c0_i32 = arith.constant 0 : i32
    %c0_i32_0 = arith.constant 0 : i32
    %c0_i32_1 = arith.constant 0 : i32
    return %c0_i32, %c0_i32_0 : i32, i32
  }
  func.func @transform_3(%arg0: i32) -> (i32, i32) {
    %c0_i32 = arith.constant 0 : i32
    %c0_i32_0 = arith.constant 0 : i32
    %c0_i32_1 = arith.constant 0 : i32
    return %c0_i32, %c0_i32_0 : i32, i32
  }
  func.func @transform_4(%arg0: i32) -> (i32, i32) {
    %c0_i32 = arith.constant 0 : i32
    %c0_i32_0 = arith.constant 0 : i32
    %c0_i32_1 = arith.constant 0 : i32
    return %c0_i32, %c0_i32_0 : i32, i32
  }
  func.func @transform_5(%arg0: i32) -> (i32, i32) {
    %c0_i32 = arith.constant 0 : i32
    %c0_i32_0 = arith.constant 0 : i32
    %c0_i32_1 = arith.constant 0 : i32
    return %c0_i32, %c0_i32_0 : i32, i32
  }
  func.func @transform_6(%arg0: i32) -> (i32, i32) {
    %c0_i32 = arith.constant 0 : i32
    %c0_i32_0 = arith.constant 0 : i32
    %c0_i32_1 = arith.constant 0 : i32
    return %c0_i32, %c0_i32_0 : i32, i32
  }
  func.func @transform_7(%arg0: i32) -> (i32, i32) {
    %c0_i32 = arith.constant 0 : i32
    %c0_i32_0 = arith.constant 0 : i32
    return %arg0, %c0_i32 : i32, i32
  }
}

</mosaic_0001>

<bundles_post_ra>
// kernel: deep_engine_forward.1
= control target key start
LH: loop header
LB: loop body
LE: loop exit
PB: predicated region body
PF: predicated region fallthrough
CT: control target
= control target key end

     0   :  { %12 = vsyncpa [#allocation3], 0  ;;  %s1578_s0 = inlined_call_operand.vmem [shape: s8[8,832], index: 0, kind: input, shape index: {}]   ;;  %s1579_s1 = inlined_call_operand.vmem [shape: f32[8,1], index: 1, kind: input, shape index: {}]   ;;  %s1580_s2 = inlined_call_operand.hbm [shape: bf16[832,256], index: 2, kind: input, shape index: {}]   ;;  %s1581_s3 = inlined_call_operand.vmem [shape: f32[1,256], index: 3, kind: input, shape index: {}]   ;;  %s1582_s4 = inlined_call_operand.vmem [shape: f32[1,256], index: 4, kind: input, shape index: {}]   ;;  %s1583_s5 = inlined_call_operand.hbm [shape: bf16[256,128], index: 5, kind: input, shape index: {}]   ;;  %s1584_s6 = inlined_call_operand.vmem [shape: f32[1,128], index: 6, kind: input, shape index: {}]   ;;  %s1585_s7 = inlined_call_operand.vmem [shape: bf16[8,128], index: 7, kind: output, shape index: {}]  }
   0x1   :  { %13 = vsyncpa [#allocation5], 0  ;;  %s1478_s24 = smov [#allocation2]   ;;  %s1430_s28 = scalar_lea.hbm %s1580_s2, 13312 }
   0x2   :  { %s23_s25 = sshll.u32 %s1478_s24, 4  ;;  %p1431_p0 = scmp.ne.s32.totalorder %s1580_s2, %s1430_s28  ;;  %s24_s25 = int_to_ptr.vmem [resolvable:$true] %s23_s25 }
   0x3   :  { %p1434_p1 = scmp.lt.u32.totalorder %s1430_s28, %s1580_s2 }
   0x5   :  { %p1436_p2 = pnand %p1434_p1, %p1431_p0 }
   0x7   :  { %1439 = shalt.err (!%p1436_p2)
}
   0x8   :  { %s1440_s10 = scalar_lea.vmem %s24_s25, 13312  ;;  %p1445_p4 = scmp.lt.s32.totalorder %s24_s25, %s24_s25 }
   0x9   :  { %p1441_p3 = scmp.ne.s32.totalorder %s24_s25, %s1440_s10  ;;  %p1446_p5 = scmp.lt.s32.totalorder %s1440_s10, %s1440_s10 }
   0xb   :  { %p1447_p6 = por %p1446_p5, %p1445_p4 }
   0xd   :  { %p1448_p7 = pnand %p1447_p6, %p1441_p3 }
   0xf   :  { %1451 = shalt.err (!%p1448_p7)
}
  0x10   :  { %s1479_s11 = smov 128   ;;  %s1480_s12 = smov 8  }
  0x11   :  { %29 = dma.hbm_to_vmem [thread:$0]  %s1580_s2, 13312, %s24_s25, [#allocation3], %s1479_s11, %s1479_s11, %s1480_s12  }
  0x12   :  { %s1481_s15 = smov [#allocation4]   ;;  %s1452_s19 = scalar_lea.hbm %s1583_s5, 2048 }
  0x13   :  { %s39_s16 = sshll.u32 %s1481_s15, 4  ;;  %p1453_p8 = scmp.ne.s32.totalorder %s1583_s5, %s1452_s19  ;;  %s40_s16 = int_to_ptr.vmem [resolvable:$true] %s39_s16 }
  0x14   :  { %p1456_p9 = scmp.lt.u32.totalorder %s1452_s19, %s1583_s5 }
  0x16   :  { %p1458_p10 = pnand %p1456_p9, %p1453_p8 }
  0x18   :  { %1461 = shalt.err (!%p1458_p10)
}
  0x19   :  { %s1462_s24 = scalar_lea.vmem %s40_s16, 2048  ;;  %p1467_p12 = scmp.lt.s32.totalorder %s40_s16, %s40_s16 }
  0x1a   :  { %p1463_p11 = scmp.ne.s32.totalorder %s40_s16, %s1462_s24  ;;  %p1468_p13 = scmp.lt.s32.totalorder %s1462_s24, %s1462_s24 }
  0x1c   :  { %p1469_p0 = por %p1468_p13, %p1467_p12 }
  0x1e   :  { %p1470_p1 = pnand %p1469_p0, %p1463_p11 }
  0x20   :  { %1473 = shalt.err (!%p1470_p1)
}
  0x21   :  { %s1482_s2 = smov 64   ;;  %s1483_s25 = smov 4  }
  0x22   :  { %45 = dma.hbm_to_vmem [thread:$0]  %s1583_s5, 2048, %s40_s16, [#allocation5], %s1482_s2, %s1482_s2, %s1483_s25  }
  0x23   :  { %1474 = dma.done.wait [#allocation3], 13312  }
  0x24   :  { %1475 = vsyncadd [#allocation3], 4294953984 }
  0x25   :  { %1476 = dma.done.wait [#allocation5], 2048  }
  0x26   :  { %1477 = vsyncadd [#allocation5], 4294965248  ;;  %v1258_v0 = vld [vmem:[#allocation2 + $0x4] ss:$8 sps:$4 sm:$0xff]   ;;  %v1484_v1 = vmov 0   ;;  %vm729_vm0 = vcmask 523264  }
  0x27   :  { %1257 = vset.pattern.permute.xlu0 %v1484_v1  ;;  %v1260_v2 = vld [vmem:[#allocation2] ss:$8 sps:$4 sm:$0xff]   ;;  %733 = vmatprep.subr.bf16.mxu0 %v1258_v0  ;;  %v1261_v3 = vld [vmem:[#allocation2 + $0x104] ss:$8 sps:$4 sm:$0xff]   ;;  %v1264_v5 = vld [vmem:[#allocation2 + $0x14] ss:$8 sps:$4 sm:$0xff]  }
  0x28   :  { %v1263_v4 = vld [vmem:[#allocation2 + $0x100] ss:$8 sps:$4 sm:$0xff]   ;;  %734 = vmatpush1.bf16.msra.mxu0 %v1260_v2  ;;  %v1266_v6 = vld [vmem:[#allocation2 + $0x10] ss:$8 sps:$4 sm:$0xff]   ;;  %774 = vmatprep.subr.bf16.mxu1 %v1261_v3  ;;  %v1267_v7 = vld [vmem:[#allocation2 + $0x114] ss:$8 sps:$4 sm:$0xff]  }
  0x29   :  { %775 = vmatpush1.bf16.msra.mxu1 %v1263_v4  ;;  %735 = vmatprep.subr.bf16.mxu0 %v1264_v5  ;;  %v1269_v8 = vld [vmem:[#allocation2 + $0x110] ss:$8 sps:$4 sm:$0xff]   ;;  %v1270_v9 = vld [vmem:[#allocation2 + $0x24] ss:$8 sps:$4 sm:$0xff]   ;;  %v1272_v10 = vld [vmem:[#allocation2 + $0x20] ss:$8 sps:$4 sm:$0xff]  }
  0x2a   :  { %776 = vmatprep.subr.bf16.mxu1 %v1267_v7  ;;  %v1273_v11 = vld [vmem:[#allocation2 + $0x124] ss:$8 sps:$4 sm:$0xff]   ;;  %v1276_v12 = vld [vmem:[#allocation2 + $0x34] ss:$8 sps:$4 sm:$0xff]   ;;  %v1275_v13 = vld [vmem:[#allocation2 + $0x120] ss:$8 sps:$4 sm:$0xff]  }
  0x2b   :  { %v1279_v14 = vld [vmem:[#allocation2 + $0x134] ss:$8 sps:$4 sm:$0xff]   ;;  %v1278_v15 = vld [vmem:[#allocation2 + $0x30] ss:$8 sps:$4 sm:$0xff]   ;;  %v1282_v16 = vld [vmem:[#allocation2 + $0x44] ss:$8 sps:$4 sm:$0xff]  }
  0x2c   :  { %736 = vmatpush1.bf16.msra.mxu0 %v1266_v6  ;;  %v1281_v17 = vld [vmem:[#allocation2 + $0x130] ss:$8 sps:$4 sm:$0xff]   ;;  %v1285_v18 = vld [vmem:[#allocation2 + $0x144] ss:$8 sps:$4 sm:$0xff]   ;;  %v1284_v19 = vld [vmem:[#allocation2 + $0x40] ss:$8 sps:$4 sm:$0xff]  }
  0x2d   :  { %737 = vmatprep.subr.bf16.mxu0 %v1270_v9  ;;  %777 = vmatpush1.bf16.msra.mxu1 %v1269_v8  ;;  %v1288_v20 = vld [vmem:[#allocation2 + $0x54] ss:$8 sps:$4 sm:$0xff]   ;;  %v1287_v21 = vld [vmem:[#allocation2 + $0x140] ss:$8 sps:$4 sm:$0xff]   ;;  %v1290_v23 = vld [vmem:[#allocation2 + $0x50] ss:$8 sps:$4 sm:$0xff]  }
  0x2e   :  { %778 = vmatprep.subr.bf16.mxu1 %v1273_v11  ;;  %v1291_v22 = vld [vmem:[#allocation2 + $0x154] ss:$8 sps:$4 sm:$0xff]   ;;  %v1294_v24 = vld [vmem:[#allocation2 + $0x64] ss:$8 sps:$4 sm:$0xff]   ;;  %v1293_v25 = vld [vmem:[#allocation2 + $0x150] ss:$8 sps:$4 sm:$0xff]  }
  0x2f   :  { %v1297_v26 = vld [vmem:[#allocation2 + $0x164] ss:$8 sps:$4 sm:$0xff]   ;;  %v1296_v27 = vld [vmem:[#allocation2 + $0x60] ss:$8 sps:$4 sm:$0xff]   ;;  %v1300_v28 = vld [vmem:[#allocation2 + $0x74] ss:$8 sps:$4 sm:$0xff]  }
  0x30   :  { %738 = vmatpush1.bf16.msra.mxu0 %v1272_v10  ;;  %v1299_v29 = vld [vmem:[#allocation2 + $0x160] ss:$8 sps:$4 sm:$0xff]   ;;  %v1303_v30 = vld [vmem:[#allocation2 + $0x174] ss:$8 sps:$4 sm:$0xff]   ;;  %v1302_v31 = vld [vmem:[#allocation2 + $0x70] ss:$8 sps:$4 sm:$0xff]  }
  0x31   :  { %739 = vmatprep.subr.bf16.mxu0 %v1276_v12  ;;  %779 = vmatpush1.bf16.msra.mxu1 %v1275_v13  ;;  %v1306_v32 = vld [vmem:[#allocation2 + $0x84] ss:$8 sps:$4 sm:$0xff]   ;;  %v1305_v33 = vld [vmem:[#allocation2 + $0x170] ss:$8 sps:$4 sm:$0xff]   ;;  %v1308_v35 = vld [vmem:[#allocation2 + $0x80] ss:$8 sps:$4 sm:$0xff]  }
  0x32   :  { %780 = vmatprep.subr.bf16.mxu1 %v1279_v14  ;;  %v1309_v34 = vld [vmem:[#allocation2 + $0x184] ss:$8 sps:$4 sm:$0xff]   ;;  %v1312_v36 = vld [vmem:[#allocation2 + $0x94] ss:$8 sps:$4 sm:$0xff]   ;;  %v1311_v37 = vld [vmem:[#allocation2 + $0x180] ss:$8 sps:$4 sm:$0xff]  }
  0x33   :  { %v1315_v38 = vld [vmem:[#allocation2 + $0x194] ss:$8 sps:$4 sm:$0xff]   ;;  %v1314_v39 = vld [vmem:[#allocation2 + $0x90] ss:$8 sps:$4 sm:$0xff]   ;;  %v1318_v40 = vld [vmem:[#allocation2 + $0xa4] ss:$8 sps:$4 sm:$0xff]  }
  0x34   :  { %740 = vmatpush1.bf16.msra.mxu0 %v1278_v15  ;;  %v1317_v41 = vld [vmem:[#allocation2 + $0x190] ss:$8 sps:$4 sm:$0xff]   ;;  %v1321_v42 = vld [vmem:[#allocation2 + $0x1a4] ss:$8 sps:$4 sm:$0xff]   ;;  %v1320_v43 = vld [vmem:[#allocation2 + $0xa0] ss:$8 sps:$4 sm:$0xff]  }
  0x35   :  { %741 = vmatprep.subr.bf16.mxu0 %v1282_v16  ;;  %781 = vmatpush1.bf16.msra.mxu1 %v1281_v17  ;;  %v1324_v44 = vld [vmem:[#allocation2 + $0xb4] ss:$8 sps:$4 sm:$0xff]   ;;  %v1323_v45 = vld [vmem:[#allocation2 + $0x1a0] ss:$8 sps:$4 sm:$0xff]   ;;  %v1326_v48 = vld [vmem:[#allocation2 + $0xb0] ss:$8 sps:$4 sm:$0xff]  }
  0x36   :  { %782 = vmatprep.subr.bf16.mxu1 %v1285_v18  ;;  %v1327_v46 = vld [vmem:[#allocation2 + $0x1b4] ss:$8 sps:$4 sm:$0xff]   ;;  %v55_v47 = vld [vmem:[%s1578_s0] sm:$0xff]  ;;  %v1329_v52 = vld [vmem:[#allocation2 + $0x1b0] ss:$8 sps:$4 sm:$0xff]  }
  0x37   :  { %v57_v49 = vunpack.c.l.s8.bf16 %v55_v47  ;;  %v58_v50 = vunpack.c.h.s8.bf16 %v55_v47  ;;  %v1330_v51 = vld [vmem:[#allocation2 + $0xc4] ss:$8 sps:$4 sm:$0xff]   ;;  %v1332_v56 = vld [vmem:[#allocation2 + $0xc0] ss:$8 sps:$4 sm:$0xff]   ;;  %v1336_v57 = vld [vmem:[#allocation2 + $0xd4] ss:$8 sps:$4 sm:$0xff]  }
  0x38   :  { %742 = vmatpush1.bf16.msra.mxu0 %v1284_v19  ;;  %v1333_v55 = vld [vmem:[#allocation2 + $0x1c4] ss:$8 sps:$4 sm:$0xff]   ;;  %v1335_v58 = vld [vmem:[#allocation2 + $0x1c0] ss:$8 sps:$4 sm:$0xff]   ;;  %v1339_v59 = vld [vmem:[#allocation2 + $0x1d4] ss:$8 sps:$4 sm:$0xff]  }
  0x39   :  { %743 = vmatprep.subr.bf16.mxu0 %v1288_v20  ;;  %783 = vmatpush1.bf16.msra.mxu1 %v1287_v21  ;;  %v1100_v53 = vcombine.high %v57_v49, %v57_v49  ;;  %v1102_v54 = vcombine.high %v58_v50, %v58_v50  ;;  %v1338_v60 = vld [vmem:[#allocation2 + $0xd0] ss:$8 sps:$4 sm:$0xff]   ;;  %v1342_v61 = vld [vmem:[#allocation2 + $0xe4] ss:$8 sps:$4 sm:$0xff]   ;;  %v1344_v0 = vld [vmem:[#allocation2 + $0xe0] ss:$8 sps:$4 sm:$0xff]   ;;  %v1099_v8 = vcombine.low %v57_v49, %v57_v49 }
  0x3a   :  { %784 = vmatprep.subr.bf16.mxu1 %v1291_v22  ;;  %v1341_v62 = vld [vmem:[#allocation2 + $0x1d0] ss:$8 sps:$4 sm:$0xff]   ;;  %v1345_v63 = vld [vmem:[#allocation2 + $0x1e4] ss:$8 sps:$4 sm:$0xff]   ;;  %v1348_v2 = vld [vmem:[#allocation2 + $0xf4] ss:$8 sps:$4 sm:$0xff]   ;;  %v1101_v11 = vcombine.low %v58_v50, %v58_v50 }
  0x3b   :  { %765 = vmatprep.mubr.bf16.mxu0 %v1100_v53  ;;  %806 = vmatprep.mubr.bf16.mxu1 %v1102_v54  ;;  %v1347_v3 = vld [vmem:[#allocation2 + $0x1e0] ss:$8 sps:$4 sm:$0xff]   ;;  %v1351_v4 = vld [vmem:[#allocation2 + $0x1f4] ss:$8 sps:$4 sm:$0xff]   ;;  %v1350_v5 = vld [vmem:[#allocation2 + $0xf0] ss:$8 sps:$4 sm:$0xff]  }
  0x3c   :  { %744 = vmatpush1.bf16.msra.mxu0 %v1290_v23  ;;  %v1356_v6 = vld [vmem:[#allocation2 + $0x204] ss:$8 sps:$4 sm:$0xff]   ;;  %v1353_v7 = vld [vmem:[#allocation2 + $0x1f0] ss:$8 sps:$4 sm:$0xff]   ;;  %v1354_v10 = vld [vmem:[#allocation2 + $0x200] ss:$8 sps:$4 sm:$0xff]  }
  0x3d   :  { %745 = vmatprep.subr.bf16.mxu0 %v1294_v24  ;;  %785 = vmatpush1.bf16.msra.mxu1 %v1293_v25  ;;  %v1392_v9 = vld [vmem:[#allocation2 + $0x304] ss:$8 sps:$4 sm:$0xff]   ;;  %v1359_v12 = vld [vmem:[#allocation2 + $0x214] ss:$8 sps:$4 sm:$0xff]   ;;  %v1390_v13 = vld [vmem:[#allocation2 + $0x300] ss:$8 sps:$4 sm:$0xff]  }
  0x3e   :  { %786 = vmatprep.subr.bf16.mxu1 %v1297_v26  ;;  %v1398_v14 = vld [vmem:[#allocation2 + $0x314] ss:$8 sps:$4 sm:$0xff]   ;;  %v1357_v15 = vld [vmem:[#allocation2 + $0x210] ss:$8 sps:$4 sm:$0xff]   ;;  %v1362_v16 = vld [vmem:[#allocation2 + $0x224] ss:$8 sps:$4 sm:$0xff]  }
  0x3f   :  { %v1360_v17 = vld [vmem:[#allocation2 + $0x220] ss:$8 sps:$4 sm:$0xff]   ;;  %v1396_v18 = vld [vmem:[#allocation2 + $0x310] ss:$8 sps:$4 sm:$0xff]   ;;  %v1365_v20 = vld [vmem:[#allocation2 + $0x234] ss:$8 sps:$4 sm:$0xff]  }
  0x40   :  { %746 = vmatpush1.bf16.msra.mxu0 %v1296_v27  ;;  %v56_v19 = vld [vmem:[%s1578_s0 + $0x8] sm:$0x3f]  ;;  %v165_v23 = vld [vmem:[%s1579_s1] sm:$0xff]  ;;  %v1410_v25 = vld [vmem:[#allocation2 + $0x334] ss:$8 sps:$4 sm:$0xff]  }
  0x41   :  { %747 = vmatprep.subr.bf16.mxu0 %v1300_v28  ;;  %787 = vmatpush1.bf16.msra.mxu1 %v1299_v29  ;;  %v1404_v21 = vld [vmem:[#allocation2 + $0x324] ss:$8 sps:$4 sm:$0xff]   ;;  %v1557_v22 = vunpack.c.l.s8.bf16 %v56_v19  ;;  %v1402_v24 = vld [vmem:[#allocation2 + $0x320] ss:$8 sps:$4 sm:$0xff]   ;;  %v1363_v26 = vld [vmem:[#allocation2 + $0x230] ss:$8 sps:$4 sm:$0xff]   ;;  %v60_v29 = vunpack.c.h.s8.bf16 %v56_v19 }
  0x42   :  { %788 = vmatprep.subr.bf16.mxu1 %v1303_v30  ;;  %169 = vperm.xlu0 %1257, %v165_v23   ;;  %v1368_v27 = vld [vmem:[#allocation2 + $0x244] ss:$8 sps:$4 sm:$0xff]   ;;  %v1408_v28 = vld [vmem:[#allocation2 + $0x330] ss:$8 sps:$4 sm:$0xff]   ;;  %v1366_v30 = vld [vmem:[#allocation2 + $0x240] ss:$8 sps:$4 sm:$0xff]  }
  0x43   :  { %v1393_v47 = vld [vmem:[#allocation2 + $0x2c0] ss:$8 sps:$4 sm:$0xff]   ;;  %v1399_v49 = vld [vmem:[#allocation2 + $0x2d0] ss:$8 sps:$4 sm:$0xff]   ;;  %v1407_v50 = vld [vmem:[#allocation2 + $0x2e4] ss:$8 sps:$4 sm:$0xff]   ;;  %v1103_v54 = vcombine.low %v1557_v22, %v1557_v22 }
  0x44   :  { %748 = vmatpush1.bf16.msra.mxu0 %v1302_v31  ;;  %v1371_v31 = vld [vmem:[#allocation2 + $0x254] ss:$8 sps:$4 sm:$0xff]   ;;  %v1411_v53 = vld [vmem:[#allocation2 + $0x2f0] ss:$8 sps:$4 sm:$0xff]  }
  0x45   :  { %749 = vmatprep.subr.bf16.mxu0 %v1306_v32  ;;  %789 = vmatpush1.bf16.msra.mxu1 %v1305_v33  ;;  %v1105_v32 = vcombine.low %v60_v29, %v60_v29  ;;  %v1369_v33 = vld [vmem:[#allocation2 + $0x250] ss:$8 sps:$4 sm:$0xff]  }
  0x46   :  { %790 = vmatprep.subr.bf16.mxu1 %v1309_v34  ;;  %v1374_v34 = vld [vmem:[#allocation2 + $0x264] ss:$8 sps:$4 sm:$0xff]  }
  0x48   :  { %750 = vmatpush1.bf16.msra.mxu0 %v1308_v35  ;;  %v1372_v35 = vld [vmem:[#allocation2 + $0x260] ss:$8 sps:$4 sm:$0xff]  }
  0x49   :  { %751 = vmatprep.subr.bf16.mxu0 %v1312_v36  ;;  %791 = vmatpush1.bf16.msra.mxu1 %v1311_v37  ;;  %v1377_v36 = vld [vmem:[#allocation2 + $0x274] ss:$8 sps:$4 sm:$0xff]   ;;  %v1375_v37 = vld [vmem:[#allocation2 + $0x270] ss:$8 sps:$4 sm:$0xff]  }
  0x4a   :  { %792 = vmatprep.subr.bf16.mxu1 %v1315_v38  ;;  %v1380_v38 = vld [vmem:[#allocation2 + $0x284] ss:$8 sps:$4 sm:$0xff]  }
  0x4c   :  { %752 = vmatpush1.bf16.msra.mxu0 %v1314_v39  ;;  %v1378_v39 = vld [vmem:[#allocation2 + $0x280] ss:$8 sps:$4 sm:$0xff]  }
  0x4d   :  { %753 = vmatprep.subr.bf16.mxu0 %v1318_v40  ;;  %793 = vmatpush1.bf16.msra.mxu1 %v1317_v41  ;;  %v1383_v40 = vld [vmem:[#allocation2 + $0x294] ss:$8 sps:$4 sm:$0xff]   ;;  %v1381_v41 = vld [vmem:[#allocation2 + $0x290] ss:$8 sps:$4 sm:$0xff]  }
  0x4e   :  { %794 = vmatprep.subr.bf16.mxu1 %v1321_v42  ;;  %v1386_v42 = vld [vmem:[#allocation2 + $0x2a4] ss:$8 sps:$4 sm:$0xff]  }
  0x50   :  { %754 = vmatpush1.bf16.msra.mxu0 %v1320_v43  ;;  %v1384_v43 = vld [vmem:[#allocation2 + $0x2a0] ss:$8 sps:$4 sm:$0xff]  }
  0x51   :  { %755 = vmatprep.subr.bf16.mxu0 %v1324_v44  ;;  %795 = vmatpush1.bf16.msra.mxu1 %v1323_v45  ;;  %v1389_v44 = vld [vmem:[#allocation2 + $0x2b4] ss:$8 sps:$4 sm:$0xff]   ;;  %v1387_v45 = vld [vmem:[#allocation2 + $0x2b0] ss:$8 sps:$4 sm:$0xff]  }
  0x52   :  { %796 = vmatprep.subr.bf16.mxu1 %v1327_v46  ;;  %v1395_v46 = vld [vmem:[#allocation2 + $0x2c4] ss:$8 sps:$4 sm:$0xff]  }
  0x54   :  { %756 = vmatpush1.bf16.msra.mxu0 %v1326_v48  ;;  %v1401_v48 = vld [vmem:[#allocation2 + $0x2d4] ss:$8 sps:$4 sm:$0xff]  }
  0x55   :  { %757 = vmatprep.subr.bf16.mxu0 %v1330_v51  ;;  %797 = vmatpush1.bf16.msra.mxu1 %v1329_v52  ;;  %v1405_v51 = vld [vmem:[#allocation2 + $0x2e0] ss:$8 sps:$4 sm:$0xff]   ;;  %v1413_v52 = vld [vmem:[#allocation2 + $0x2f4] ss:$8 sps:$4 sm:$0xff]  }
  0x56   :  { %798 = vmatprep.subr.bf16.mxu1 %v1333_v55  ;;  %v1414_v55 = vld [vmem:[#allocation4 + $0x40] sm:$0xff]  }
  0x58   :  { %758 = vmatpush1.bf16.msra.mxu0 %v1332_v56  ;;  %v1415_v56 = vld [vmem:[#allocation4] sm:$0xff]  }
  0x59   :  { %759 = vmatprep.subr.bf16.mxu0 %v1336_v57  ;;  %799 = vmatpush1.bf16.msra.mxu1 %v1335_v58  ;;  %v1416_v57 = vld [vmem:[#allocation4 + $0x48] sm:$0xff]  }
  0x5a   :  { %800 = vmatprep.subr.bf16.mxu1 %v1339_v59  ;;  %v1417_v58 = vld [vmem:[#allocation4 + $0x8] sm:$0xff]   ;;  %v1418_v59 = vld [vmem:[#allocation4 + $0x50] sm:$0xff]  }
  0x5c   :  { %760 = vmatpush1.bf16.msra.mxu0 %v1338_v60  ;;  %v1419_v60 = vld [vmem:[#allocation4 + $0x10] sm:$0xff]  }
  0x5d   :  { %761 = vmatprep.subr.bf16.mxu0 %v1342_v61  ;;  %801 = vmatpush1.bf16.msra.mxu1 %v1341_v62  ;;  %v1420_v61 = vld [vmem:[#allocation4 + $0x58] sm:$0xff]  }
  0x5e   :  { %802 = vmatprep.subr.bf16.mxu1 %v1345_v63  ;;  %v1421_v62 = vld [vmem:[#allocation4 + $0x18] sm:$0xff]   ;;  %v1422_v63 = vld [vmem:[#allocation4 + $0x60] sm:$0xff]  }
  0x60   :  { %762 = vmatpush1.bf16.msra.mxu0 %v1344_v0  ;;  %v1423_v0 = vld [vmem:[#allocation4 + $0x20] sm:$0xff]  }
  0x61   :  { %763 = vmatprep.subr.bf16.mxu0 %v1348_v2  ;;  %803 = vmatpush1.bf16.msra.mxu1 %v1347_v3  ;;  %v1424_v2 = vld [vmem:[#allocation4 + $0x68] sm:$0xff]  }
  0x62   :  { %804 = vmatprep.subr.bf16.mxu1 %v1351_v4  ;;  %v1425_v3 = vld [vmem:[#allocation4 + $0x28] sm:$0xff]   ;;  %v1426_v4 = vld [vmem:[#allocation4 + $0x70] sm:$0xff]  }
  0x64   :  { %764 = vmatpush1.bf16.msra.mxu0 %v1350_v5  ;;  %v1427_v5 = vld [vmem:[#allocation4 + $0x30] sm:$0xff]  }
  0x65   :  { %815 = vmatprep.subr.bf16.mxu0 %v1356_v6  ;;  %805 = vmatpush1.bf16.msra.mxu1 %v1353_v7  ;;  %v1428_v6 = vld [vmem:[#allocation4 + $0x78] sm:$0xff]  }
  0x66   :  { %856 = vmatprep.subr.bf16.mxu1 %v1392_v9  ;;  %v1429_v7 = vld [vmem:[#allocation4 + $0x38] sm:$0xff]  }
  0x67   :  { %766 = vmatmul.mubr.bf16.vlgmr.msra.gmra.mrb[0].mxu0 %v1099_v8  ;;  %v173_v8 = vlaneseq }
  0x68   :  { %816 = vmatpush1.bf16.msra.mxu0 %v1354_v10  ;;  %807 = vmatmul.mubr.bf16.vlgmr.msra.gmra.mrb[0].mxu1 %v1101_v11  ;;  %v166_v11 = vld [vmem:[%s1581_s3] sm:$0x3] }
  0x69   :  { %817 = vmatprep.subr.bf16.mxu0 %v1359_v12  ;;  %857 = vmatpush1.bf16.msra.mxu1 %v1390_v13  ;;  %v174_v9 = vshrl.u32 %v173_v8, 7 }
  0x6a   :  { %888 = vmatprep.mubr.bf16.mxu1 %v1484_v1  ;;  %858 = vmatprep.subr.bf16.mxu1 %v1398_v14  ;;  %v1104_v1 = vcombine.high %v1557_v22, %v1557_v22 }
  0x6b   :  { %v175_v10 = vsub.s32 0, %v174_v9  ;;  %v179_v12 = vsub.s32 1, %v174_v9 }
  0x6c   :  { %818 = vmatpush1.bf16.msra.mxu0 %v1357_v15  ;;  %847 = vmatprep.mubr.bf16.mxu0 %v1104_v1 }
  0x6d   :  { %819 = vmatprep.subr.bf16.mxu0 %v1362_v16  ;;  %859 = vmatpush1.bf16.msra.mxu1 %v1396_v18  ;;  %v176_v13 = vrot.slane %v166_v11, %v175_v10  ;;  %v180_v14 = vrot.slane %v166_v11, %v179_v12 }
  0x6e   :  { %860 = vmatprep.subr.bf16.mxu1 %v1404_v21 }
  0x70   :  { %820 = vmatpush1.bf16.msra.mxu0 %v1360_v17 }
  0x71   :  { %821 = vmatprep.subr.bf16.mxu0 %v1365_v20  ;;  %861 = vmatpush1.bf16.msra.mxu1 %v1402_v24 }
  0x72   :  { %862 = vmatprep.subr.bf16.mxu1 %v1410_v25 }
  0x74   :  { %822 = vmatpush1.bf16.msra.mxu0 %v1363_v26 }
  0x75   :  { %823 = vmatprep.subr.bf16.mxu0 %v1368_v27  ;;  %863 = vmatpush1.bf16.msra.mxu1 %v1408_v28 }
  0x76   :  { %1228 = vmatprep.subr.bf16.mxu1 %v1414_v55 }
  0x78   :  { %824 = vmatpush1.bf16.msra.mxu0 %v1366_v30  ;;  %1210 = vmatmul.mubr.msk.bf16.vlgmr.msra.gmra.mrb[4].mxu1 %vm729_vm0, %v1105_v32 }
  0x79   :  { %825 = vmatprep.subr.bf16.mxu0 %v1371_v31  ;;  %1229 = vmatpush3.bf16.msra.mxu1 %v1415_v56 }
  0x7a   :  { %1230 = vmatprep.subr.bf16.mxu1 %v1416_v57 }
  0x7c   :  { %826 = vmatpush1.bf16.msra.mxu0 %v1369_v33  ;;  %v897_v33 = vld [vmem:[%s1582_s4] sm:$0x3] }
  0x7d   :  { %827 = vmatprep.subr.bf16.mxu0 %v1374_v34  ;;  %1231 = vmatpush3.bf16.msra.mxu1 %v1417_v58 }
  0x7e   :  { %1232 = vmatprep.subr.bf16.mxu1 %v1418_v59 }
  0x80   :  { %828 = vmatpush1.bf16.msra.mxu0 %v1372_v35 }
  0x81   :  { %829 = vmatprep.subr.bf16.mxu0 %v1377_v36  ;;  %1233 = vmatpush3.bf16.msra.mxu1 %v1419_v60  ;;  %v902_v36 = vrot.slane %v897_v33, %v175_v10 }
  0x82   :  { %1234 = vmatprep.subr.bf16.mxu1 %v1420_v61 }
  0x84   :  { %830 = vmatpush1.bf16.msra.mxu0 %v1375_v37 }
  0x85   :  { %831 = vmatprep.subr.bf16.mxu0 %v1380_v38  ;;  %1235 = vmatpush3.bf16.msra.mxu1 %v1421_v62 }
  0x86   :  { %1236 = vmatprep.subr.bf16.mxu1 %v1422_v63 }
  0x88   :  { %832 = vmatpush1.bf16.msra.mxu0 %v1378_v39  ;;  %v906_v39 = vrot.slane %v897_v33, %v179_v12 }
  0x89   :  { %833 = vmatprep.subr.bf16.mxu0 %v1383_v40  ;;  %1237 = vmatpush3.bf16.msra.mxu1 %v1423_v0 }
  0x8a   :  { %1238 = vmatprep.subr.bf16.mxu1 %v1424_v2 }
  0x8c   :  { %834 = vmatpush1.bf16.msra.mxu0 %v1381_v41 }
  0x8d   :  { %835 = vmatprep.subr.bf16.mxu0 %v1386_v42  ;;  %1239 = vmatpush3.bf16.msra.mxu1 %v1425_v3 }
  0x8e   :  { %1240 = vmatprep.subr.bf16.mxu1 %v1426_v4 }
  0x90   :  { %836 = vmatpush1.bf16.msra.mxu0 %v1384_v43 }
  0x91   :  { %837 = vmatprep.subr.bf16.mxu0 %v1389_v44  ;;  %1241 = vmatpush3.bf16.msra.mxu1 %v1427_v5 }
  0x92   :  { %1242 = vmatprep.subr.bf16.mxu1 %v1428_v6 }
  0x94   :  { %838 = vmatpush1.bf16.msra.mxu0 %v1387_v45 }
  0x95   :  { %839 = vmatprep.subr.bf16.mxu0 %v1395_v46  ;;  %1243 = vmatpush3.bf16.msra.mxu1 %v1429_v7 }
  0x98   :  { %840 = vmatpush1.bf16.msra.mxu0 %v1393_v47 }
  0x99   :  { %841 = vmatprep.subr.bf16.mxu0 %v1401_v48 }
  0x9c   :  { %842 = vmatpush1.bf16.msra.mxu0 %v1399_v49 }
  0x9d   :  { %843 = vmatprep.subr.bf16.mxu0 %v1407_v50 }
  0xa0   :  { %844 = vmatpush1.bf16.msra.mxu0 %v1405_v51  ;;  %v1211_v51 = vld [vmem:[%s1584_s6] ss:$0 sm:$0xff] }
  0xa1   :  { %845 = vmatprep.subr.bf16.mxu0 %v1413_v52 }
  0xa4   :  { %846 = vmatpush1.bf16.msra.mxu0 %v1411_v53 }
  0xa7   :  { %848 = vmatmul.mubr.bf16.vlgmr.msra.gmra.mrb[4].mxu0 %v1103_v54 }
  0xc1   :  { %v170_v15 = vpop.permute.xlu0 %169 }
  0xc2   :  { %v183_v16 = vmul.f32 %v176_v13, %v170_v15  ;;  %v184_v17 = vmul.f32 %v180_v14, %v170_v15 }
 0x13a   :  { %v767_v18 = vpop.f32.mrb[0].mxu0 }
 0x13b   :  { %v768_v19 = vadd.f32 %v767_v18, %v183_v16  ;;  %v769_v20 = vpop.f32.mrb[1].mxu0  ;;  %v808_v23 = vpop.f32.mrb[0].mxu1 }
 0x13c   :  { %v770_v21 = vadd.f32 %v769_v20, %v184_v17  ;;  %v771_v22 = vpop.f32.mrb[2].mxu0  ;;  %v810_v1 = vpop.f32.mrb[1].mxu1 }
 0x13d   :  { %v809_v24 = vadd.f32 %v808_v23, %v768_v19  ;;  %v772_v25 = vpop.f32.mrb[3].mxu0  ;;  %v812_v27 = vpop.f32.mrb[2].mxu1 }
 0x13e   :  { %v811_v26 = vadd.f32 %v810_v1, %v770_v21  ;;  %v813_v28 = vpop.f32.mrb[3].mxu1 }
 0x14b   :  { %v890_v29 = vpop.f32.mrb[4].mxu1 }
 0x14c   :  { %v892_v30 = vpop.f32.mrb[5].mxu1 }
 0x14d   :  { %v894_v31 = vpop.f32.mrb[6].mxu1 }
 0x14e   :  { %v895_v32 = vpop.f32.mrb[7].mxu1 }
 0x17a   :  { %v849_v34 = vpop.f32.mrb[4].mxu0 }
 0x17b   :  { %v850_v35 = vadd.f32 %v849_v34, %v809_v24  ;;  %v851_v37 = vpop.f32.mrb[5].mxu0 }
 0x17c   :  { %v852_v38 = vadd.f32 %v851_v37, %v811_v26  ;;  %v853_v40 = vpop.f32.mrb[6].mxu0 }
 0x17d   :  { %v891_v41 = vadd.f32 %v890_v29, %v850_v35  ;;  %v854_v42 = vpop.f32.mrb[7].mxu0 }
 0x17e   :  { %v893_v43 = vadd.f32 %v892_v30, %v852_v38 }
 0x17f   :  { %v909_v44 = vadd.f32 %v902_v36, %v891_v41 }
 0x180   :  { %v910_v45 = vadd.f32 %v906_v39, %v893_v43 }
 0x181   :  { %v911_v46 = vmax.f32 %v909_v44, 0.0 }
 0x182   :  { %v912_v47 = vmax.f32 %v910_v45, 0.0 }
 0x183   :  { %v913_v49 = vpack.c.bf16 %v911_v46, %v911_v46 }
 0x184   :  { %v914_v48 = vpack.c.bf16 %v912_v47, %v912_v47 }
 0x186   :  { %1082 = vmatprep.mubr.bf16.mxu1 %v914_v48 }
 0x187   :  { %1083 = vmatmul.mubr.bf16.vlgmr.msra.gmra.mrb[8].mxu1 %v913_v49 }
 0x25a   :  { %v1244_v50 = vpop.f32.mrb[8].mxu1 }
 0x25b   :  { %v1245_v52 = vpop.f32.mrb[9].mxu1 }
 0x25c   :  { %v1246_v53 = vadd.f32 %v1245_v52, %v1244_v50  ;;  %v1247_v54 = vpop.f32.mrb[10].mxu1 }
 0x25d   :  { %v1248_v55 = vpop.f32.mrb[11].mxu1 }
 0x25e   :  { %v1085_v56 = vadd.f32 %v1246_v53, %v1211_v51 }
 0x260   :  { %v1090_v57 = vmax.f32 %v1085_v56, 0.0 }
 0x262   :  { %v1091_v58 = vpack.c.bf16 %v1090_v57, %v1090_v57 }
 0x264   :  { %1092 = vst [vmem:[%s1585_s7] sm:$0xf] %v1091_v58 }
 0x265   :  { %1097 = vsyncpa [#allocation3], 1 }
 0x266   :  { %1098 = vsyncpa [#allocation5], 1 }

</bundles_post_ra>
